<compile_context>
chip_gen: v5e
topology: v5e:2x2
jax: 0.10.0
libtpu: 0.0.40
codegen_flags: <defaults>
</compile_context>

<pallas_src>
import functools

import jax
import jax.numpy as jnp
from jax.experimental import pallas as pl
from jax.experimental.pallas import tpu as pltpu

EPS = 1e-5


def _round_up(v, m):
    return (v + m - 1) // m * m


def _round_down(v, m):
    return v // m * m


def _vmem_limits():
    """Generation-aware (budget_for_tiling, vmem_limit_bytes)."""
    try:
        phys = int(pltpu.get_tpu_info().vmem_capacity_bytes)
    except Exception:
        phys = 64 * 1024 * 1024  # conservative (v7x-sized) fallback
    # v5e/v6e (128 MiB phys) -> 96 MiB limit; v7x (64 MiB phys) -> 48 MiB limit.
    limit = min(phys * 3 // 4, 100 * 1024 * 1024)
    budget = min(limit - 4 * 1024 * 1024, int(limit * 0.9))
    return budget, limit


# -----------------------------------------------------------------------------
# Single-pass path: full-N column blocks, grid over F tiles only.
# -----------------------------------------------------------------------------
def _bn_single_pass_kernel(x_ref, gamma_ref, beta_ref, o_ref):
    # x_ref: (N, TF)   gamma_ref/beta_ref: (1, TF)   o_ref: (N, TF)
    inv_n = 1.0 / x_ref.shape[0]

    # Sweep 1: mean (sublane reduction).
    mean = jnp.sum(x_ref[...].astype(jnp.float32), axis=0, keepdims=True) * inv_n

    # Sweep 2: centered sum of squares.  Re-read x from VMEM (cheap vld) so no
    # full f32 tile stays live across phases (avoids vreg spills on big tiles),
    # and centering avoids E[x^2]-E[x]^2 cancellation.
    xc = x_ref[...].astype(jnp.float32) - mean
    var = jnp.sum(xc * xc, axis=0, keepdims=True) * inv_n      # biased variance
    inv_std = jax.lax.rsqrt(var + EPS)                          # EUP slot

    scale = gamma_ref[...].astype(jnp.float32) * inv_std        # (1, TF)
    shift = beta_ref[...].astype(jnp.float32) - mean * scale    # (1, TF)

    # Sweep 3: fused affine, re-reading x from VMEM.
    o_ref[...] = (x_ref[...].astype(jnp.float32) * scale + shift).astype(o_ref.dtype)


def _choose_tile_f_single_pass(n_rows, f, itemsize, budget):
    """Lane-dense tile width for full-N column blocks, or None if it can't fit."""
    # Per lane per row: x (2 pipeline bufs) + out (2 bufs) in input dtype,
    # plus ~2 f32 temps of headroom for in-kernel values.
    bytes_per_lane = n_rows * (4 * itemsize + 8)
    cap_vmem = _round_down(budget // bytes_per_lane, 128)
    if cap_vmem < 128:
        return None  # full-N column blocks don't fit -> two-pass fallback
    # Target ~4 MiB x-blocks per grid step so the ~0.35 us/step pipeline
    # overhead is negligible and DMAs stay near HBM roofline.
    cap_target = max(128, _round_down((4 * 1024 * 1024) // (n_rows * itemsize), 128))
    return int(min(cap_vmem, cap_target))


# -----------------------------------------------------------------------------
# Two-pass fallback for large N: (1) per-feature sum / sum-of-squares with an
# "arbitrary" reduction axis over N tiles, (2) elementwise affine apply.
# -----------------------------------------------------------------------------
def _stats_kernel(x_ref, sum_ref, sq_ref, *, n_total, tile_n):
    @pl.when(pl.program_id(1) == 0)
    def _():
        sum_ref[...] = jnp.zeros_like(sum_ref)
        sq_ref[...] = jnp.zeros_like(sq_ref)

    x = x_ref[...].astype(jnp.float32)
    # Mask rows of the ragged last N block (garbage rows must not pollute sums).
    row = jax.lax.broadcasted_iota(jnp.int32, x.shape, 0) + pl.program_id(1) * tile_n
    x = jnp.where(row < n_total, x, 0.0)

    sum_ref[...] += jnp.sum(x, axis=0, keepdims=True)
    sq_ref[...] += jnp.sum(x * x, axis=0, keepdims=True)


def _apply_kernel(x_ref, scale_ref, shift_ref, o_ref):
    o_ref[...] = (x_ref[...].astype(jnp.float32) * scale_ref[...]
                  + shift_ref[...]).astype(o_ref.dtype)


def _batch_norm_two_pass(x2d, g2d, b2d, *, budget, limit, max_tile_n=None):
    N, F = x2d.shape
    itemsize = x2d.dtype.itemsize

    tile_f = F if F <= 1024 else 1024                      # full-dim or lane-dense strip
    lane_bytes = tile_f * (4 * itemsize + 8)               # x/out bufs + f32 headroom
    cap_n = max(8, _round_down(budget // lane_bytes, 8))
    tgt_n = max(8, _round_down((2 * 1024 * 1024) // (tile_f * itemsize), 8))
    tile_n = min(cap_n, tgt_n)
    if max_tile_n is not None:
        tile_n = min(tile_n, max(8, _round_down(max_tile_n, 8)))
    if tile_n >= N:
        tile_n = N                                         # full-dim block is always legal
    tile_n = int(tile_n)

    grid_f = (F + tile_f - 1) // tile_f
    grid_n = (N + tile_n - 1) // tile_n

    stats = functools.partial(_stats_kernel, n_total=N, tile_n=tile_n)
    s1, s2 = pl.pallas_call(
        stats,
        out_shape=(jax.ShapeDtypeStruct((1, F), jnp.float32),
                   jax.ShapeDtypeStruct((1, F), jnp.float32)),
        grid_spec=pl.GridSpec(
            grid=(grid_f, grid_n),
            in_specs=[pl.BlockSpec((tile_n, tile_f), lambda f, n: (n, f))],
            out_specs=(pl.BlockSpec((1, tile_f), lambda f, n: (0, f)),
                       pl.BlockSpec((1, tile_f), lambda f, n: (0, f))),
        ),
        compiler_params=pltpu.CompilerParams(
            dimension_semantics=("parallel", "arbitrary"),
            vmem_limit_bytes=limit),
        cost_estimate=pl.CostEstimate(
            flops=3 * N * F, transcendentals=0,
            bytes_accessed=N * F * itemsize + 2 * F * 4),
    )(x2d)

    # Tiny per-feature epilogue in plain JAX (F elements).
    # TODO(synk): raw-moment variance here can lose precision for data with a
    # large mean at very large N; a centered second reduction pass would fix it.
    mean = s1 / N
    var = jnp.maximum(s2 / N - mean * mean, 0.0)
    inv_std = jax.lax.rsqrt(var + EPS)
    scale = g2d.astype(jnp.float32) * inv_std
    shift = b2d.astype(jnp.float32) - mean * scale

    out2d = pl.pallas_call(
        _apply_kernel,
        out_shape=jax.ShapeDtypeStruct((N, F), x2d.dtype),
        grid_spec=pl.GridSpec(
            grid=(grid_f, grid_n),
            in_specs=[pl.BlockSpec((tile_n, tile_f), lambda f, n: (n, f)),
                      pl.BlockSpec((1, tile_f), lambda f, n: (0, f)),
                      pl.BlockSpec((1, tile_f), lambda f, n: (0, f))],
            out_specs=pl.BlockSpec((tile_n, tile_f), lambda f, n: (n, f)),
        ),
        compiler_params=pltpu.CompilerParams(
            dimension_semantics=("parallel", "parallel"),
            vmem_limit_bytes=limit),
        cost_estimate=pl.CostEstimate(
            flops=2 * N * F, transcendentals=0,
            bytes_accessed=2 * N * F * itemsize + 2 * F * 4),
    )(x2d, scale, shift)
    return out2d


# -----------------------------------------------------------------------------
# Public wrapper
# -----------------------------------------------------------------------------
def batch_norm_2d(x, gamma, beta, dim1, dim2, *, force_two_pass=False, _max_tile_n=None):
    """x: (N, dim1, dim2) -> (N, dim1, dim2); nn.BatchNorm1d training forward."""
    N = x.shape[0]
    F = dim1 * dim2
    itemsize = x.dtype.itemsize
    budget, limit = _vmem_limits()

    x2d = x.reshape(N, F)
    g2d = gamma.reshape(1, F)
    b2d = beta.reshape(1, F)

    tile_cap = None if force_two_pass else _choose_tile_f_single_pass(N, F, itemsize, budget)
    if tile_cap is None:
        out2d = _batch_norm_two_pass(x2d, g2d, b2d, budget=budget, limit=limit,
                                     max_tile_n=_max_tile_n)
        return out2d.reshape(N, dim1, dim2)

    if F <= tile_cap:
        # F fits in a single block.  Still split into two lane-dense tiles when
        # possible so ("parallel",) can shard across v7x's two TensorCores
        # (negligible extra per-step cost on 1-TC v5e/v6e).
        tile_f = _round_up(-(-F // 2), 128) if F >= 256 else F
    else:
        tile_f = tile_cap
    num_steps = (F + tile_f - 1) // tile_f   # ragged last tile handled by masking

    x_spec = pl.BlockSpec((N, tile_f), lambda i: (0, i))
    if num_steps >= 3 and N * tile_f * itemsize < (512 << 10):
        # Deeper buffering hides exposed DMA latency for small, numerous blocks.
        x_spec = pl.BlockSpec((N, tile_f), lambda i: (0, i),
                              pipeline_mode=pl.Buffered(3))

    out2d = pl.pallas_call(
        _bn_single_pass_kernel,
        out_shape=jax.ShapeDtypeStruct((N, F), x.dtype),
        grid_spec=pl.GridSpec(
            grid=(num_steps,),
            in_specs=[x_spec,
                      pl.BlockSpec((1, tile_f), lambda i: (0, i)),
                      pl.BlockSpec((1, tile_f), lambda i: (0, i))],
            out_specs=pl.BlockSpec((N, tile_f), lambda i: (0, i)),
        ),
        compiler_params=pltpu.CompilerParams(
            dimension_semantics=("parallel",),
            vmem_limit_bytes=limit),
        cost_estimate=pl.CostEstimate(
            flops=8 * N * F,
            transcendentals=F,
            bytes_accessed=2 * N * F * itemsize + 2 * F * gamma.dtype.itemsize),
    )(x2d, g2d, b2d)

    return out2d.reshape(N, dim1, dim2)


# -----------------------------------------------------------------------------
# Self-test
# -----------------------------------------------------------------------------
def _reference(x, gamma, beta, dim1, dim2):
    n = x.shape[0]
    x2d = x.reshape(n, dim1 * dim2)
    mean = jnp.mean(x2d, axis=0, keepdims=True)
    var = jnp.mean((x2d - mean) ** 2, axis=0, keepdims=True)
    y = (x2d - mean) / jnp.sqrt(var + EPS) * gamma + beta
    return y.reshape(n, dim1, dim2)


if __name__ == "__main__":
    # Module hyper-params consistent with the forward: F = dim1*dim2 = 64.
    dim1, dim2 = 4, 16
    N = 8

    key = jax.random.PRNGKey(0)
    x = jax.random.normal(key, (N, dim1, dim2), dtype=jnp.float32)
    # nn.BatchNorm1d default affine init.
    gamma = jnp.ones((dim1 * dim2,), dtype=jnp.float32)   # weight
    beta = jnp.zeros((dim1 * dim2,), dtype=jnp.float32)   # bias
    # TODO(synk): running_mean/running_var updates are stateful training-side
    # bookkeeping and do not affect the forward output; not modeled here.

    out = batch_norm_2d(x, gamma, beta, dim1, dim2)
    jax.block_until_ready(out)
    ref = _reference(x, gamma, beta, dim1, dim2)
    assert jnp.max(jnp.abs(out - ref)) < 1e-4, "single-pass mismatch vs reference"

    # Exercise the large-N two-pass fallback (forced) at small shapes, with a
    # ragged final N block so the in-kernel row mask is covered, and a
    # non-trivial affine.
    x2 = jax.random.normal(jax.random.PRNGKey(1), (20, dim1, dim2), dtype=jnp.float32)
    gamma2 = 1.0 + 0.1 * jax.random.normal(jax.random.PRNGKey(2), (dim1 * dim2,), jnp.float32)
    beta2 = 0.1 * jax.random.normal(jax.random.PRNGKey(3), (dim1 * dim2,), jnp.float32)
    out2 = batch_norm_2d(x2, gamma2, beta2, dim1, dim2,
                         force_two_pass=True, _max_tile_n=8)
    jax.block_until_ready(out2)
    ref2 = _reference(x2, gamma2, beta2, dim1, dim2)
    assert jnp.max(jnp.abs(out2 - ref2)) < 1e-4, "two-pass mismatch vs reference"

    print("KERNEL_OK")
</pallas_src>

<mosaic_0001>
module attributes {stable_mosaic.version = 11 : i64} {
  func.func @_bn_single_pass_kernel(%arg0: i32, %arg1: memref<8x64xf32, #tpu.memory_space<vmem>>, %arg2: memref<1x64xf32, #tpu.memory_space<vmem>>, %arg3: memref<1x64xf32, #tpu.memory_space<vmem>>, %arg4: memref<8x64xf32, #tpu.memory_space<vmem>>) attributes {dimension_semantics = [#tpu.dimension_semantics<parallel>], iteration_bounds = array<i64: 1>, scalar_prefetch = 0 : i64, scratch_operands = 0 : i64, tpu.core_type = #tpu.core_type<tc>, window_params = [{transform_indices = @transform_0, window_bounds = array<i64: 8, 64>}, {transform_indices = @transform_1, window_bounds = array<i64: 1, 64>}, {transform_indices = @transform_2, window_bounds = array<i64: 1, 64>}, {transform_indices = @transform_3, window_bounds = array<i64: 8, 64>}]} {
    %c0 = arith.constant 0 : index
    %c0_0 = arith.constant 0 : index
    %0 = vector.load %arg1[%c0, %c0_0] : memref<8x64xf32, #tpu.memory_space<vmem>>, vector<8x64xf32>
    %cst = arith.constant dense<0.000000e+00> : vector<64xf32>
    %1 = vector.multi_reduction <add>, %0, %cst [0] : vector<8x64xf32> to vector<64xf32>
    %2 = vector.shape_cast %1 : vector<64xf32> to vector<1x64xf32>
    %cst_1 = arith.constant 1.250000e-01 : f32
    %3 = vector.broadcast %cst_1 : f32 to vector<1x64xf32>
    %4 = arith.mulf %2, %3 : vector<1x64xf32>
    %c0_2 = arith.constant 0 : index
    %c0_3 = arith.constant 0 : index
    %5 = vector.load %arg1[%c0_2, %c0_3] : memref<8x64xf32, #tpu.memory_space<vmem>>, vector<8x64xf32>
    %6 = vector.broadcast %4 : vector<1x64xf32> to vector<8x64xf32>
    %7 = arith.subf %5, %6 : vector<8x64xf32>
    %8 = arith.mulf %7, %7 : vector<8x64xf32>
    %cst_4 = arith.constant dense<0.000000e+00> : vector<64xf32>
    %9 = vector.multi_reduction <add>, %8, %cst_4 [0] : vector<8x64xf32> to vector<64xf32>
    %10 = vector.shape_cast %9 : vector<64xf32> to vector<1x64xf32>
    %cst_5 = arith.constant 1.250000e-01 : f32
    %11 = vector.broadcast %cst_5 : f32 to vector<1x64xf32>
    %12 = arith.mulf %10, %11 : vector<1x64xf32>
    %cst_6 = arith.constant 9.99999974E-6 : f32
    %13 = vector.broadcast %cst_6 : f32 to vector<1x64xf32>
    %14 = arith.addf %12, %13 : vector<1x64xf32>
    %15 = math.rsqrt %14 : vector<1x64xf32>
    %c0_7 = arith.constant 0 : index
    %c0_8 = arith.constant 0 : index
    %16 = vector.load %arg2[%c0_7, %c0_8] : memref<1x64xf32, #tpu.memory_space<vmem>>, vector<1x64xf32>
    %17 = arith.mulf %16, %15 : vector<1x64xf32>
    %c0_9 = arith.constant 0 : index
    %c0_10 = arith.constant 0 : index
    %18 = vector.load %arg3[%c0_9, %c0_10] : memref<1x64xf32, #tpu.memory_space<vmem>>, vector<1x64xf32>
    %19 = arith.mulf %4, %17 : vector<1x64xf32>
    %20 = arith.subf %18, %19 : vector<1x64xf32>
    %c0_11 = arith.constant 0 : index
    %c0_12 = arith.constant 0 : index
    %21 = vector.load %arg1[%c0_11, %c0_12] : memref<8x64xf32, #tpu.memory_space<vmem>>, vector<8x64xf32>
    %22 = vector.broadcast %17 : vector<1x64xf32> to vector<8x64xf32>
    %23 = arith.mulf %21, %22 : vector<8x64xf32>
    %24 = vector.broadcast %20 : vector<1x64xf32> to vector<8x64xf32>
    %25 = arith.addf %23, %24 : vector<8x64xf32>
    %c0_13 = arith.constant 0 : index
    %c0_14 = arith.constant 0 : index
    %26 = vector.load %arg4[%c0_13, %c0_14] : memref<8x64xf32, #tpu.memory_space<vmem>>, vector<8x64xf32>
    tpu.vector_store %arg4[%c0_13, %c0_14], %25 {strides = array<i32>} : memref<8x64xf32, #tpu.memory_space<vmem>>, vector<8x64xf32>,
    return
  }
  func.func @transform_0(%arg0: i32) -> (i32, i32) {
    %c0_i32 = arith.constant 0 : i32
    %c0_i32_0 = arith.constant 0 : i32
    return %c0_i32, %arg0 : i32, i32
  }
  func.func @transform_1(%arg0: i32) -> (i32, i32) {
    %c0_i32 = arith.constant 0 : i32
    %c0_i32_0 = arith.constant 0 : i32
    return %c0_i32, %arg0 : i32, i32
  }
  func.func @transform_2(%arg0: i32) -> (i32, i32) {
    %c0_i32 = arith.constant 0 : i32
    %c0_i32_0 = arith.constant 0 : i32
    return %c0_i32, %arg0 : i32, i32
  }
  func.func @transform_3(%arg0: i32) -> (i32, i32) {
    %c0_i32 = arith.constant 0 : i32
    %c0_i32_0 = arith.constant 0 : i32
    return %c0_i32, %arg0 : i32, i32
  }
}

</mosaic_0001>

<bundles_post_ra>
// kernel: tpu_custom_call.1
= control target key start
LH: loop header
LB: loop body
LE: loop exit
PB: predicated region body
PF: predicated region fallthrough
CT: control target
= control target key end

     0   :  { %8 = vsyncpa [#allocation3], 0  ;;  %s227_s0 = inlined_call_operand.hbm [shape: f32[8,64], index: 0, kind: input, shape index: {}]   ;;  %s228_s1 = inlined_call_operand.hbm [shape: f32[1,64], index: 1, kind: input, shape index: {}]   ;;  %s229_s2 = inlined_call_operand.vmem [shape: f32[1,64], index: 2, kind: input, shape index: {}]   ;;  %s230_s3 = inlined_call_operand.hbm [shape: f32[8,64], index: 3, kind: output, shape index: {}]  }
   0x1   :  { %9 = vsyncpa [#allocation6], 0 }
   0x2   :  { %10 = vsyncpa [#allocation4], 0  ;;  %s16_s14 = sshll.u32 %s227_s0, 4  ;;  %s189_s15 = smov [#allocation2]   ;;  %s17_s14 = int_to_ptr.hbm [resolvable:$true] %s16_s14 }
   0x3   :  { %s18_s16 = sshll.u32 %s189_s15, 4  ;;  %s27_s19 = sshll.u32 %s228_s1, 4  ;;  %s19_s16 = int_to_ptr.vmem [resolvable:$true] %s18_s16  ;;  %s28_s19 = int_to_ptr.hbm [resolvable:$true] %s27_s19 }
   0x4   :  { %21 = dma.hbm_to_vmem [thread:$0]  %s17_s14, 128, %s19_s16, [#allocation3]  }
   0x5   :  { %s190_s20 = smov [#allocation5]  }
   0x6   :  { %s29_s21 = sshll.u32 %s190_s20, 4  ;;  %s30_s21 = int_to_ptr.vmem [resolvable:$true] %s29_s21 }
   0x7   :  { %32 = dma.hbm_to_vmem [thread:$0]  %s28_s19, 16, %s30_s21, [#allocation6]  }
   0x8   :  { %183 = dma.done.wait [#allocation3], 128  }
   0x9   :  { %184 = vsyncadd [#allocation3], 4294967168 }
   0xa   :  { %185 = dma.done.wait [#allocation6], 16  }
   0xb   :  { %186 = vsyncadd [#allocation6], 4294967280  ;;  %vm44_vm0 = vcmask 523264   ;;  %v43_v0 = vld [vmem:[#allocation2] sm:$0xff]  ;;  %v74_v26 = vld [vmem:[#allocation5] sm:$0x1] }
   0xc   :  { %v45_v1 = vsel %vm44_vm0, %v43_v0, 0.0  ;;  %v76_v29 = vld [vmem:[%s229_s2] sm:$0x1]  ;;  %s191_s22 = smov [#allocation7]   ;;  %s95_s26 = sshll.u32 %s230_s3, 4  ;;  %s96_s26 = int_to_ptr.hbm [resolvable:$true] %s95_s26 }
   0xd   :  { %v46_v2 = vrot.slane %v45_v1, 4  ;;  %s93_s23 = sshll.u32 %s191_s22, 4  ;;  %s94_s23 = int_to_ptr.vmem [resolvable:$true] %s93_s23 }
   0xf   :  { %v47_v3 = vadd.f32 %v46_v2, %v45_v1 }
  0x11   :  { %v48_v4 = vrot.slane %v47_v3, 2 }
  0x13   :  { %v49_v5 = vadd.f32 %v48_v4, %v47_v3 }
  0x15   :  { %v50_v6 = vrot.slane %v49_v5, 1 }
  0x17   :  { %v51_v7 = vadd.f32 %v50_v6, %v49_v5 }
  0x19   :  { %v52_v8 = vmul.f32 0.125, %v51_v7 }
  0x1b   :  { %v53_v9 = vsub.f32 %v43_v0, %v52_v8 }
  0x1d   :  { %v54_v10 = vmul.f32 %v53_v9, %v53_v9 }
  0x1f   :  { %v55_v11 = vsel %vm44_vm0, %v54_v10, 0.0 }
  0x20   :  { %v56_v12 = vrot.slane %v55_v11, 4 }
  0x22   :  { %v57_v13 = vadd.f32 %v56_v12, %v55_v11 }
  0x24   :  { %v58_v14 = vrot.slane %v57_v13, 2 }
  0x26   :  { %v59_v15 = vadd.f32 %v58_v14, %v57_v13 }
  0x28   :  { %v60_v16 = vrot.slane %v59_v15, 1 }
  0x2a   :  { %v61_v17 = vadd.f32 %v60_v16, %v59_v15 }
  0x2c   :  { %v62_v18 = vmul.f32 0.125, %v61_v17 }
  0x2e   :  { %v63_v19 = vadd.f32 1e-05, %v62_v18 }
  0x30   :  { %109 = vrsqrt.f32 %v63_v19  ;;  %vm70_vm1 = vweird.f32 %v63_v19 }
  0x36   :  { %v110_v20 = vpop.eup %109 }
  0x37   :  { %v65_v21 = vmul.f32 %v110_v20, %v63_v19  ;;  %vm71_vm2 = vweird.f32 %v110_v20 }
  0x38   :  { %vm72_vm3 = vmor %vm70_vm1, %vm71_vm2 }
  0x39   :  { %v66_v22 = vmul.f32 %v110_v20, %v65_v21 }
  0x3b   :  { %v67_v23 = vmul.f32 0.5, %v66_v22 }
  0x3d   :  { %v68_v24 = vsub.f32 1.5, %v67_v23 }
  0x3f   :  { %v69_v25 = vmul.f32 %v110_v20, %v68_v24 }
  0x41   :  { %v73_v27 = vsel %vm72_vm3, %v110_v20, %v69_v25 }
  0x42   :  { %v75_v28 = vmul.f32 %v74_v26, %v73_v27 }
  0x44   :  { %v77_v30 = vmul.f32 %v75_v28, %v52_v8  ;;  %v80_v31 = vperm.slane %v75_v28, 0 }
  0x46   :  { %v78_v32 = vsub.f32 %v76_v29, %v77_v30  ;;  %v82_v33 = vmul.f32 %v80_v31, %v43_v0 }
  0x48   :  { %v84_v34 = vperm.slane %v78_v32, 0 }
  0x4a   :  { %v86_v35 = vadd.f32 %v84_v34, %v82_v33 }
  0x4c   :  { %87 = vst.msk [vmem:[#allocation7] sm:$0xff] %vm44_vm0, %v86_v35 }
  0x4d   :  { %98 = dma.vmem_to_hbm [thread:$0]  %s94_s23, 128, %s96_s26, [#allocation4]  }
  0x4e   :  { %187 = dma.done.wait [#allocation4], 128  }
  0x4f   :  { %188 = vsyncadd [#allocation4], 4294967168 }
  0x50   :  { %103 = vsyncpa [#allocation3], 1 }
  0x51   :  { %104 = vsyncpa [#allocation6], 1 }
  0x52   :  { %105 = vsyncpa [#allocation4], 1 }

</bundles_post_ra>
